<compile_context>
chip_gen: v7x
topology: tpu7x:2x2x1
jax: 0.10.0
libtpu: 0.0.40
codegen_flags: <defaults>
</compile_context>

<pallas_src>
import functools

import jax
import jax.numpy as jnp
from jax import lax
from jax.experimental import pallas as pl
from jax.experimental.pallas import tpu as pltpu


# ---------------------------------------------------------------------------
# Phase 2 kernel: the sequential GRU1/GRU2 recurrence (time-blocked).
# ---------------------------------------------------------------------------
def _recurrence_kernel(x0_ref, gi1_ref, whh1_ref, bhh1n_ref, w2_ref, b2_ref,
                       out_ref, h1_ref, h2_ref, xh_ref, *, h_size):
    H = h_size
    tb = x0_ref.shape[0]          # time steps owned by this grid iteration

    @pl.when(pl.program_id(0) == 0)
    def _init():
        h1_ref[...] = jnp.zeros_like(h1_ref)
        h2_ref[...] = jnp.zeros_like(h2_ref)

    # Grid-invariant weights: load once per grid step, reused by every time step.
    whh1 = whh1_ref[...]          # (H, 3H)  bf16
    bhh1n = bhh1n_ref[...]        # (1, H)   f32 (hidden bias of the n gate)
    w2 = w2_ref[...]              # (2H, 4H) bf16 fused GRU2 weights
    b2 = b2_ref[...]              # (1, 4H)  f32 fused GRU2 biases

    def step(i, carry):
        h1, h2 = carry                            # (B, H) f32 each, in registers
        x0 = x0_ref[i]                            # (B, H)   residual / GRU1 input
        gi1 = gi1_ref[i]                          # (B, 3H)  precomputed input gates

        # ---- GRU1: only the hidden-side matmul sits on the serial path ----
        gh1 = jnp.dot(h1.astype(jnp.bfloat16), whh1,
                      preferred_element_type=jnp.float32)          # (B, 3H)
        r1 = jax.nn.sigmoid(gi1[:, :H] + gh1[:, :H])
        z1 = jax.nn.sigmoid(gi1[:, H:2 * H] + gh1[:, H:2 * H])
        n1 = jnp.tanh(gi1[:, 2 * H:] + r1 * (gh1[:, 2 * H:] + bhh1n))
        h1n = (1.0 - z1) * n1 + z1 * h1
        x1 = h1n + x0                             # residual 1

        # ---- GRU2: single fused (B, 2H) x (2H, 4H) matmul -> [r+z | i_n | h_n]
        xh_ref[:, :H] = x1
        xh_ref[:, H:] = h2
        g2 = jnp.dot(xh_ref[...].astype(jnp.bfloat16), w2,
                     preferred_element_type=jnp.float32) + b2      # (B, 4H)
        r2 = jax.nn.sigmoid(g2[:, :H])
        z2 = jax.nn.sigmoid(g2[:, H:2 * H])
        n2 = jnp.tanh(g2[:, 2 * H:3 * H] + r2 * g2[:, 3 * H:])
        h2n = (1.0 - z2) * n2 + z2 * h2
        x2 = h2n + x1                             # residual 2

        out_ref[i] = x2
        return h1n, h2n

    h1f, h2f = lax.fori_loop(0, tb, step, (h1_ref[...], h2_ref[...]))
    h1_ref[...] = h1f                             # carry across time blocks
    h2_ref[...] = h2f


# ---------------------------------------------------------------------------
# Phase 3 kernel: parallel output head  fc1 -> relu -> fc2 -> log_softmax.
# ---------------------------------------------------------------------------
def _head_kernel(x_ref, wfc1_ref, bfc1_ref, wfc2_ref, bfc2_ref, out_ref):
    x = x_ref[...].astype(jnp.bfloat16)
    y = jnp.dot(x, wfc1_ref[...], preferred_element_type=jnp.float32) + bfc1_ref[...]
    y = jnp.maximum(y, 0.0)
    logits = jnp.dot(y.astype(jnp.bfloat16), wfc2_ref[...],
                     preferred_element_type=jnp.float32) + bfc2_ref[...]
    m = jnp.max(logits, axis=-1, keepdims=True)
    lse = jnp.log(jnp.sum(jnp.exp(logits - m), axis=-1, keepdims=True)) + m
    out_ref[...] = (logits - lse).astype(out_ref.dtype)


# ---------------------------------------------------------------------------
# Wrapper helpers.
# ---------------------------------------------------------------------------
def _upsample_linear(mels, scale):
    """nn.Upsample(scale_factor=scale, mode='linear', align_corners=True)."""
    _, _, t_in = mels.shape
    t_out = t_in * scale
    pos = jnp.arange(t_out, dtype=jnp.float32) * (t_in - 1) / max(t_out - 1, 1)
    i0 = jnp.floor(pos).astype(jnp.int32)
    i1 = jnp.minimum(i0 + 1, t_in - 1)
    w = (pos - i0.astype(jnp.float32))[None, None, :]
    return mels[:, :, i0] * (1.0 - w) + mels[:, :, i1] * w


def _prepare_weights(params):
    """bf16 weights, folded biases, fused GRU2 matrix [x|h] @ W2 -> [r+z|i_n|h_n]."""
    H = params["wI"].shape[1]
    bf16 = lambda a: a.astype(jnp.bfloat16)

    # GRU1: fold the r/z halves of the hidden bias into the (hoisted) input bias.
    bih1, bhh1 = params["bih1"], params["bhh1"]
    bi1_folded = bih1 + jnp.concatenate(
        [bhh1[:, :2 * H], jnp.zeros((1, H), jnp.float32)], axis=-1)
    bhh1_n = bhh1[:, 2 * H:]

    # GRU2 fused weights: rows [0:H] take x1, rows [H:2H] take h2.
    wih2, whh2 = params["wih2"], params["whh2"]
    zeros_h = jnp.zeros((H, H), jnp.float32)
    w2_top = jnp.concatenate([wih2, zeros_h], axis=-1)                       # (H,4H)
    w2_bot = jnp.concatenate([whh2[:, :2 * H], zeros_h, whh2[:, 2 * H:]], axis=-1)
    w2cat = jnp.concatenate([w2_top, w2_bot], axis=0)                        # (2H,4H)
    bih2, bhh2 = params["bih2"], params["bhh2"]
    b2cat = jnp.concatenate(
        [bih2[:, :2 * H] + bhh2[:, :2 * H], bih2[:, 2 * H:], bhh2[:, 2 * H:]],
        axis=-1)                                                             # (1,4H)

    return {
        "wI": bf16(params["wI"]), "bI": params["bI"],
        "wih1": bf16(params["wih1"]), "bi1": bi1_folded,
        "whh1": bf16(params["whh1"]), "bhh1_n": bhh1_n,
        "w2": bf16(w2cat), "b2": b2cat,
        "wfc1": bf16(params["wfc1"]), "bfc1": params["bfc1"],
        "wfc2": bf16(params["wfc2"]), "bfc2": params["bfc2"],
    }


def wavernn_forward(x, mels, params, hop_size, *, time_block=128, row_block=256):
    """x: (B, T) f32, mels: (B, num_mels, T_mel) f32, T = hop_size*T_mel -> (B,T,H)."""
    B, T = x.shape
    F_dim, H = params["wI"].shape
    w = _prepare_weights(params)

    # ---------------- Phase 1: parallel pre-compute (plain XLA) --------------
    mels_up = jnp.transpose(_upsample_linear(mels, hop_size), (0, 2, 1))  # (B,T,M)
    feats = jnp.concatenate([x[..., None], mels_up], axis=-1)             # (B,T,F)

    feats2d = feats.reshape(B * T, F_dim).astype(jnp.bfloat16)
    x0 = jnp.dot(feats2d, w["wI"], preferred_element_type=jnp.float32) + w["bI"]
    gi1 = jnp.dot(x0.astype(jnp.bfloat16), w["wih1"],
                  preferred_element_type=jnp.float32) + w["bi1"]

    # time-major, padded so each grid step owns `tb` consecutive samples
    x0_tm = jnp.transpose(x0.reshape(B, T, H), (1, 0, 2))          # (T, B, H)
    gi1_tm = jnp.transpose(gi1.reshape(B, T, 3 * H), (1, 0, 2))    # (T, B, 3H)
    tb = min(time_block, T)
    t_pad = pl.cdiv(T, tb) * tb
    if t_pad != T:
        pad = ((0, t_pad - T), (0, 0), (0, 0))
        x0_tm = jnp.pad(x0_tm, pad)
        gi1_tm = jnp.pad(gi1_tm, pad)

    def const(arr):
        return pl.BlockSpec(arr.shape, lambda t: (0,) * arr.ndim)

    def _vmem(weights, block_bytes):
        wb = sum(int(a.size) * a.dtype.itemsize for a in weights)
        est = 2 * (wb + block_bytes) + (4 << 20)          # double-buffered + headroom
        return int(min(max(est, 32 << 20), 64 << 20))

    # ---------------- Phase 2: sequential recurrence kernel ------------------
    serial_vmem = _vmem((w["whh1"], w["bhh1_n"], w["w2"], w["b2"]),
                        4 * tb * B * (H + 3 * H + H))
    x2_tm = pl.pallas_call(
        functools.partial(_recurrence_kernel, h_size=H),
        out_shape=jax.ShapeDtypeStruct((t_pad, B, H), jnp.float32),
        grid_spec=pltpu.PrefetchScalarGridSpec(
            num_scalar_prefetch=0,
            grid=(t_pad // tb,),
            in_specs=[
                pl.BlockSpec((tb, B, H), lambda t: (t, 0, 0)),
                pl.BlockSpec((tb, B, 3 * H), lambda t: (t, 0, 0)),
                const(w["whh1"]), const(w["bhh1_n"]),
                const(w["w2"]), const(w["b2"]),
            ],
            out_specs=pl.BlockSpec((tb, B, H), lambda t: (t, 0, 0)),
            scratch_shapes=[
                pltpu.VMEM((B, H), jnp.float32),       # h1 carry across blocks
                pltpu.VMEM((B, H), jnp.float32),       # h2 carry across blocks
                pltpu.VMEM((B, 2 * H), jnp.float32),   # [x1 | h2] staging buffer
            ],
        ),
        compiler_params=pltpu.CompilerParams(
            dimension_semantics=("arbitrary",),   # recurrence: strictly sequential
            vmem_limit_bytes=serial_vmem),
    )(x0_tm, gi1_tm, w["whh1"], w["bhh1_n"], w["w2"], w["b2"])

    # ---------------- Phase 3: parallel output head --------------------------
    rows = t_pad * B
    x2_rows = x2_tm.reshape(rows, H)
    rb = row_block if rows >= row_block else rows
    rows_pad = pl.cdiv(rows, rb) * rb
    if rows_pad != rows:
        x2_rows = jnp.pad(x2_rows, ((0, rows_pad - rows), (0, 0)))

    head_vmem = _vmem((w["wfc1"], w["bfc1"], w["wfc2"], w["bfc2"]),
                      4 * rb * (H + H))
    logp_rows = pl.pallas_call(
        _head_kernel,
        out_shape=jax.ShapeDtypeStruct((rows_pad, H), jnp.float32),
        grid_spec=pltpu.PrefetchScalarGridSpec(
            num_scalar_prefetch=0,
            grid=(rows_pad // rb,),
            in_specs=[pl.BlockSpec((rb, H), lambda r: (r, 0)),
                      const(w["wfc1"]), const(w["bfc1"]),
                      const(w["wfc2"]), const(w["bfc2"])],
            out_specs=pl.BlockSpec((rb, H), lambda r: (r, 0)),
        ),
        compiler_params=pltpu.CompilerParams(
            dimension_semantics=("parallel",),
            vmem_limit_bytes=head_vmem),
    )(x2_rows, w["wfc1"], w["bfc1"], w["wfc2"], w["bfc2"])

    logp = logp_rows[:rows].reshape(t_pad, B, H)[:T]       # (T, B, H)
    return jnp.transpose(logp, (1, 0, 2))                  # (B, T, H)


# ---------------------------------------------------------------------------
# Pure-JAX reference (same bf16 weights / f32 accumulation) for validation.
# ---------------------------------------------------------------------------
def wavernn_reference(x, mels, params, hop_size):
    B, _ = x.shape
    H = params["wI"].shape[1]
    mels_up = jnp.transpose(_upsample_linear(mels, hop_size), (0, 2, 1))
    feats = jnp.concatenate([x[..., None], mels_up], axis=-1)      # (B, T, F)

    def mm(a, wgt):
        return jnp.dot(a.astype(jnp.bfloat16), wgt.astype(jnp.bfloat16),
                       preferred_element_type=jnp.float32)

    x0 = mm(feats, params["wI"]) + params["bI"]

    def gru(x_seq, wih, whh, bih, bhh):
        def step(h, xt):
            gi = mm(xt, wih) + bih
            gh = mm(h, whh) + bhh
            r = jax.nn.sigmoid(gi[:, :H] + gh[:, :H])
            z = jax.nn.sigmoid(gi[:, H:2 * H] + gh[:, H:2 * H])
            n = jnp.tanh(gi[:, 2 * H:] + r * gh[:, 2 * H:])
            hn = (1.0 - z) * n + z * h
            return hn, hn
        h0 = jnp.zeros((B, H), jnp.float32)
        _, ys = lax.scan(step, h0, jnp.transpose(x_seq, (1, 0, 2)))
        return jnp.transpose(ys, (1, 0, 2))

    y1 = gru(x0, params["wih1"], params["whh1"], params["bih1"], params["bhh1"]) + x0
    y2 = gru(y1, params["wih2"], params["whh2"], params["bih2"], params["bhh2"]) + y1
    z1 = jnp.maximum(mm(y2, params["wfc1"]) + params["bfc1"], 0.0)
    logits = mm(z1, params["wfc2"]) + params["bfc2"]
    return jax.nn.log_softmax(logits, axis=-1)


def init_params(key, bits, num_mels):
    """Deterministic synthetic weights matching WaveRNN.__init__ shapes.

    PyTorch Linear/GRU store weights as (out, in); kept pre-transposed (in, out)
    so kernels do x @ W directly. Biases kept as (1, out)."""
    H = 2 ** bits
    F_dim = 1 + num_mels
    keys = jax.random.split(key, 14)
    s = 0.1

    def w(k, shape):
        return (s * jax.random.normal(k, shape)).astype(jnp.float32)

    return {
        "wI":   w(keys[0], (F_dim, H)),
        "bI":   w(keys[1], (1, H)),
        "wih1": w(keys[2], (H, 3 * H)),
        "whh1": w(keys[3], (H, 3 * H)),
        "bih1": w(keys[4], (1, 3 * H)),
        "bhh1": w(keys[5], (1, 3 * H)),
        "wih2": w(keys[6], (H, 3 * H)),
        "whh2": w(keys[7], (H, 3 * H)),
        "bih2": w(keys[8], (1, 3 * H)),
        "bhh2": w(keys[9], (1, 3 * H)),
        "wfc1": w(keys[10], (H, H)),
        "bfc1": w(keys[11], (1, H)),
        "wfc2": w(keys[12], (H, H)),
        "bfc2": w(keys[13], (1, H)),
    }


if __name__ == "__main__":
    bits = 5          # h_size = 32
    hop_size = 4
    num_mels = 4
    B = 2
    T_mel = 4
    T = T_mel * hop_size   # 16

    key = jax.random.PRNGKey(0)
    k_x, k_m, k_p = jax.random.split(key, 3)

    x = jax.random.uniform(k_x, (B, T), dtype=jnp.float32, minval=-1.0, maxval=1.0)
    mels = jax.random.normal(k_m, (B, num_mels, T_mel), dtype=jnp.float32)
    params = init_params(k_p, bits, num_mels)

    fwd = jax.jit(functools.partial(wavernn_forward, hop_size=hop_size))
    out = fwd(x, mels, params)
    jax.block_until_ready(out)

    assert out.shape == (B, T, 2 ** bits)
    # log-probabilities must exponentiate-sum to ~1
    assert bool(jnp.all(jnp.abs(jnp.sum(jnp.exp(out), axis=-1) - 1.0) < 1e-4))
    # match the pure-JAX reference using the same bf16 weights / f32 accumulation
    ref = wavernn_reference(x, mels, params, hop_size)
    max_err = float(jnp.max(jnp.abs(out - ref)))
    assert max_err < 2e-3, max_err
    print("KERNEL_OK")
</pallas_src>

<mosaic_0001>
module attributes {stable_mosaic.version = 11 : i64} {
  func.func @_head_kernel(%arg0: i32, %arg1: memref<32x32xf32, #tpu.memory_space<vmem>>, %arg2: memref<32x32xbf16, #tpu.memory_space<vmem>>, %arg3: memref<1x32xf32, #tpu.memory_space<vmem>>, %arg4: memref<32x32xbf16, #tpu.memory_space<vmem>>, %arg5: memref<1x32xf32, #tpu.memory_space<vmem>>, %arg6: memref<32x32xf32, #tpu.memory_space<vmem>>) attributes {dimension_semantics = [#tpu.dimension_semantics<parallel>], iteration_bounds = array<i64: 1>, scalar_prefetch = 0 : i64, scratch_operands = 0 : i64, tpu.core_type = #tpu.core_type<tc>, window_params = [{transform_indices = @transform_0, window_bounds = array<i64: 32, 32>}, {pipeline_mode = #tpu.pipeline_mode<synchronous>, transform_indices = @transform_1, window_bounds = array<i64: 32, 32>}, {pipeline_mode = #tpu.pipeline_mode<synchronous>, transform_indices = @transform_2, window_bounds = array<i64: 1, 32>}, {pipeline_mode = #tpu.pipeline_mode<synchronous>, transform_indices = @transform_3, window_bounds = array<i64: 32, 32>}, {pipeline_mode = #tpu.pipeline_mode<synchronous>, transform_indices = @transform_4, window_bounds = array<i64: 1, 32>}, {transform_indices = @transform_5, window_bounds = array<i64: 32, 32>}]} {
    %c0 = arith.constant 0 : index
    %c0_0 = arith.constant 0 : index
    %0 = vector.load %arg1[%c0, %c0_0] : memref<32x32xf32, #tpu.memory_space<vmem>>, vector<32x32xf32>
    %1 = arith.truncf %0 : vector<32x32xf32> to vector<32x32xbf16>
    %c0_1 = arith.constant 0 : index
    %c0_2 = arith.constant 0 : index
    %2 = vector.load %arg2[%c0_1, %c0_2] : memref<32x32xbf16, #tpu.memory_space<vmem>>, vector<32x32xbf16>
    %cst = arith.constant dense<0.000000e+00> : vector<32x32xf32>
    %3 = tpu.matmul %1, %2, %cst {dimension_numbers = #tpu.dot_dimension_numbers<[1], [0], [0], [1], [0, 0, 1, 1], [], []>} : vector<32x32xbf16>, vector<32x32xbf16>, vector<32x32xf32> -> vector<32x32xf32>
    %c0_3 = arith.constant 0 : index
    %c0_4 = arith.constant 0 : index
    %4 = vector.load %arg3[%c0_3, %c0_4] : memref<1x32xf32, #tpu.memory_space<vmem>>, vector<1x32xf32>
    %5 = vector.broadcast %4 : vector<1x32xf32> to vector<32x32xf32>
    %6 = arith.addf %3, %5 : vector<32x32xf32>
    %cst_5 = arith.constant 0.000000e+00 : f32
    %7 = vector.broadcast %cst_5 : f32 to vector<32x32xf32>
    %8 = arith.maximumf %6, %7 : vector<32x32xf32>
    %9 = arith.truncf %8 : vector<32x32xf32> to vector<32x32xbf16>
    %c0_6 = arith.constant 0 : index
    %c0_7 = arith.constant 0 : index
    %10 = vector.load %arg4[%c0_6, %c0_7] : memref<32x32xbf16, #tpu.memory_space<vmem>>, vector<32x32xbf16>
    %cst_8 = arith.constant dense<0.000000e+00> : vector<32x32xf32>
    %11 = tpu.matmul %9, %10, %cst_8 {dimension_numbers = #tpu.dot_dimension_numbers<[1], [0], [0], [1], [0, 0, 1, 1], [], []>} : vector<32x32xbf16>, vector<32x32xbf16>, vector<32x32xf32> -> vector<32x32xf32>
    %c0_9 = arith.constant 0 : index
    %c0_10 = arith.constant 0 : index
    %12 = vector.load %arg5[%c0_9, %c0_10] : memref<1x32xf32, #tpu.memory_space<vmem>>, vector<1x32xf32>
    %13 = vector.broadcast %12 : vector<1x32xf32> to vector<32x32xf32>
    %14 = arith.addf %11, %13 : vector<32x32xf32>
    %cst_11 = arith.constant dense<0xFF800000> : vector<32xf32>
    %15 = vector.multi_reduction <maximumf>, %14, %cst_11 [1] : vector<32x32xf32> to vector<32xf32>
    %16 = vector.shape_cast %15 : vector<32xf32> to vector<32x1xf32>
    %17 = vector.broadcast %16 : vector<32x1xf32> to vector<32x32xf32>
    %18 = arith.subf %14, %17 : vector<32x32xf32>
    %19 = math.exp %18 : vector<32x32xf32>
    %cst_12 = arith.constant dense<0.000000e+00> : vector<32xf32>
    %20 = vector.multi_reduction <add>, %19, %cst_12 [1] : vector<32x32xf32> to vector<32xf32>
    %21 = vector.shape_cast %20 : vector<32xf32> to vector<32x1xf32>
    %22 = math.log %21 : vector<32x1xf32>
    %23 = arith.addf %22, %16 : vector<32x1xf32>
    %24 = vector.broadcast %23 : vector<32x1xf32> to vector<32x32xf32>
    %25 = arith.subf %14, %24 : vector<32x32xf32>
    %c0_13 = arith.constant 0 : index
    %c0_14 = arith.constant 0 : index
    %26 = vector.load %arg6[%c0_13, %c0_14] : memref<32x32xf32, #tpu.memory_space<vmem>>, vector<32x32xf32>
    tpu.vector_store %arg6[%c0_13, %c0_14], %25 {strides = array<i32>} : memref<32x32xf32, #tpu.memory_space<vmem>>, vector<32x32xf32>,
    return
  }
  func.func @transform_0(%arg0: i32) -> (i32, i32) {
    %c0_i32 = arith.constant 0 : i32
    %c0_i32_0 = arith.constant 0 : i32
    return %arg0, %c0_i32 : i32, i32
  }
  func.func @transform_1(%arg0: i32) -> (i32, i32) {
    %c0_i32 = arith.constant 0 : i32
    %c0_i32_0 = arith.constant 0 : i32
    %c0_i32_1 = arith.constant 0 : i32
    return %c0_i32, %c0_i32_0 : i32, i32
  }
  func.func @transform_2(%arg0: i32) -> (i32, i32) {
    %c0_i32 = arith.constant 0 : i32
    %c0_i32_0 = arith.constant 0 : i32
    %c0_i32_1 = arith.constant 0 : i32
    return %c0_i32, %c0_i32_0 : i32, i32
  }
  func.func @transform_3(%arg0: i32) -> (i32, i32) {
    %c0_i32 = arith.constant 0 : i32
    %c0_i32_0 = arith.constant 0 : i32
    %c0_i32_1 = arith.constant 0 : i32
    return %c0_i32, %c0_i32_0 : i32, i32
  }
  func.func @transform_4(%arg0: i32) -> (i32, i32) {
    %c0_i32 = arith.constant 0 : i32
    %c0_i32_0 = arith.constant 0 : i32
    %c0_i32_1 = arith.constant 0 : i32
    return %c0_i32, %c0_i32_0 : i32, i32
  }
  func.func @transform_5(%arg0: i32) -> (i32, i32) {
    %c0_i32 = arith.constant 0 : i32
    %c0_i32_0 = arith.constant 0 : i32
    return %arg0, %c0_i32 : i32, i32
  }
}

module attributes {stable_mosaic.version = 11 : i64} {
  func.func @_recurrence_kernel(%arg0: i32, %arg1: memref<16x2x32xf32, #tpu.memory_space<vmem>>, %arg2: memref<16x2x96xf32, #tpu.memory_space<vmem>>, %arg3: memref<32x96xbf16, #tpu.memory_space<vmem>>, %arg4: memref<1x32xf32, #tpu.memory_space<vmem>>, %arg5: memref<64x128xbf16, #tpu.memory_space<vmem>>, %arg6: memref<1x128xf32, #tpu.memory_space<vmem>>, %arg7: memref<16x2x32xf32, #tpu.memory_space<vmem>>, %arg8: memref<2x32xf32, #tpu.memory_space<vmem>>, %arg9: memref<2x32xf32, #tpu.memory_space<vmem>>, %arg10: memref<2x64xf32, #tpu.memory_space<vmem>>) attributes {dimension_semantics = [#tpu.dimension_semantics<arbitrary>], iteration_bounds = array<i64: 1>, scalar_prefetch = 0 : i64, scratch_operands = 3 : i64, tpu.core_type = #tpu.core_type<tc>, window_params = [{transform_indices = @transform_0, window_bounds = array<i64: 16, 2, 32>}, {transform_indices = @transform_1, window_bounds = array<i64: 16, 2, 96>}, {pipeline_mode = #tpu.pipeline_mode<synchronous>, transform_indices = @transform_2, window_bounds = array<i64: 32, 96>}, {pipeline_mode = #tpu.pipeline_mode<synchronous>, transform_indices = @transform_3, window_bounds = array<i64: 1, 32>}, {pipeline_mode = #tpu.pipeline_mode<synchronous>, transform_indices = @transform_4, window_bounds = array<i64: 64, 128>}, {pipeline_mode = #tpu.pipeline_mode<synchronous>, transform_indices = @transform_5, window_bounds = array<i64: 1, 128>}, {transform_indices = @transform_6, window_bounds = array<i64: 16, 2, 32>}]} {
    %c0_i32 = arith.constant 0 : i32
    %0 = arith.cmpi eq, %arg0, %c0_i32 : i32
    %1 = arith.extui %0 : i1 to i32
    %c0_i32_0 = arith.constant 0 : i32
    %2 = arith.cmpi ne, %1, %c0_i32_0 : i32
    scf.if %2 {
      %cst = arith.constant 0.000000e+00 : f32
      %13 = vector.broadcast %cst : f32 to vector<2x32xf32>
      %c0_18 = arith.constant 0 : index
      %c0_19 = arith.constant 0 : index
      %14 = vector.load %arg8[%c0_18, %c0_19] : memref<2x32xf32, #tpu.memory_space<vmem>>, vector<2x32xf32>
      tpu.vector_store %arg8[%c0_18, %c0_19], %13 {strides = array<i32>} : memref<2x32xf32, #tpu.memory_space<vmem>>, vector<2x32xf32>,
      %cst_20 = arith.constant 0.000000e+00 : f32
      %15 = vector.broadcast %cst_20 : f32 to vector<2x32xf32>
      %c0_21 = arith.constant 0 : index
      %c0_22 = arith.constant 0 : index
      %16 = vector.load %arg9[%c0_21, %c0_22] : memref<2x32xf32, #tpu.memory_space<vmem>>, vector<2x32xf32>
      tpu.vector_store %arg9[%c0_21, %c0_22], %15 {strides = array<i32>} : memref<2x32xf32, #tpu.memory_space<vmem>>, vector<2x32xf32>,
    } else {
    }
    %c0 = arith.constant 0 : index
    %c0_1 = arith.constant 0 : index
    %3 = vector.load %arg3[%c0, %c0_1] : memref<32x96xbf16, #tpu.memory_space<vmem>>, vector<32x96xbf16>
    %c0_2 = arith.constant 0 : index
    %c0_3 = arith.constant 0 : index
    %4 = vector.load %arg4[%c0_2, %c0_3] : memref<1x32xf32, #tpu.memory_space<vmem>>, vector<1x32xf32>
    %c0_4 = arith.constant 0 : index
    %c0_5 = arith.constant 0 : index
    %5 = vector.load %arg5[%c0_4, %c0_5] : memref<64x128xbf16, #tpu.memory_space<vmem>>, vector<64x128xbf16>
    %c0_6 = arith.constant 0 : index
    %c0_7 = arith.constant 0 : index
    %6 = vector.load %arg6[%c0_6, %c0_7] : memref<1x128xf32, #tpu.memory_space<vmem>>, vector<1x128xf32>
    %c0_8 = arith.constant 0 : index
    %c0_9 = arith.constant 0 : index
    %7 = vector.load %arg8[%c0_8, %c0_9] : memref<2x32xf32, #tpu.memory_space<vmem>>, vector<2x32xf32>
    %c0_10 = arith.constant 0 : index
    %c0_11 = arith.constant 0 : index
    %8 = vector.load %arg9[%c0_10, %c0_11] : memref<2x32xf32, #tpu.memory_space<vmem>>, vector<2x32xf32>
    %c0_i32_12 = arith.constant 0 : i32
    %c16_i32 = arith.constant 16 : i32
    %9 = arith.addi %c0_i32_12, %c16_i32 : i32
    %c1_i32 = arith.constant 1 : i32
    %10:2 = scf.for %arg11 = %c0_i32_12 to %9 step %c1_i32 iter_args(%arg12 = %7, %arg13 = %8) -> (vector<2x32xf32>, vector<2x32xf32>)  : i32 {
      %13 = arith.index_cast %arg11 : i32 to index
      %c0_18 = arith.constant 0 : index
      %c0_19 = arith.constant 0 : index
      %14 = vector.load %arg1[%13, %c0_18, %c0_19] : memref<16x2x32xf32, #tpu.memory_space<vmem>>, vector<1x2x32xf32>
      %15 = vector.shape_cast %14 : vector<1x2x32xf32> to vector<2x32xf32>
      %16 = arith.index_cast %arg11 : i32 to index
      %c0_20 = arith.constant 0 : index
      %c0_21 = arith.constant 0 : index
      %17 = vector.load %arg2[%16, %c0_20, %c0_21] : memref<16x2x96xf32, #tpu.memory_space<vmem>>, vector<1x2x96xf32>
      %18 = vector.shape_cast %17 : vector<1x2x96xf32> to vector<2x96xf32>
      %19 = arith.truncf %arg12 : vector<2x32xf32> to vector<2x32xbf16>
      %cst = arith.constant dense<0.000000e+00> : vector<2x96xf32>
      %20 = tpu.matmul %19, %3, %cst {dimension_numbers = #tpu.dot_dimension_numbers<[1], [0], [0], [1], [0, 0, 1, 1], [], []>} : vector<2x32xbf16>, vector<32x96xbf16>, vector<2x96xf32> -> vector<2x96xf32>
      %21 = vector.extract_strided_slice %18 {offsets = [0, 0], sizes = [2, 32], strides = [1, 1]} : vector<2x96xf32> to vector<2x32xf32>
      %22 = vector.extract_strided_slice %20 {offsets = [0, 0], sizes = [2, 32], strides = [1, 1]} : vector<2x96xf32> to vector<2x32xf32>
      %23 = arith.addf %21, %22 : vector<2x32xf32>
      %24 = arith.negf %23 : vector<2x32xf32>
      %25 = math.exp %24 : vector<2x32xf32>
      %cst_22 = arith.constant 1.000000e+00 : f32
      %26 = vector.broadcast %cst_22 : f32 to vector<2x32xf32>
      %27 = arith.addf %26, %25 : vector<2x32xf32>
      %28 = arith.divf %26, %27 : vector<2x32xf32>
      %29 = vector.extract_strided_slice %18 {offsets = [0, 32], sizes = [2, 32], strides = [1, 1]} : vector<2x96xf32> to vector<2x32xf32>
      %30 = vector.extract_strided_slice %20 {offsets = [0, 32], sizes = [2, 32], strides = [1, 1]} : vector<2x96xf32> to vector<2x32xf32>
      %31 = arith.addf %29, %30 : vector<2x32xf32>
      %32 = arith.negf %31 : vector<2x32xf32>
      %33 = math.exp %32 : vector<2x32xf32>
      %cst_23 = arith.constant 1.000000e+00 : f32
      %34 = vector.broadcast %cst_23 : f32 to vector<2x32xf32>
      %35 = arith.addf %34, %33 : vector<2x32xf32>
      %36 = arith.divf %34, %35 : vector<2x32xf32>
      %37 = vector.extract_strided_slice %18 {offsets = [0, 64], sizes = [2, 32], strides = [1, 1]} : vector<2x96xf32> to vector<2x32xf32>
      %38 = vector.extract_strided_slice %20 {offsets = [0, 64], sizes = [2, 32], strides = [1, 1]} : vector<2x96xf32> to vector<2x32xf32>
      %39 = vector.broadcast %4 : vector<1x32xf32> to vector<2x32xf32>
      %40 = arith.addf %38, %39 : vector<2x32xf32>
      %41 = arith.mulf %28, %40 : vector<2x32xf32>
      %42 = arith.addf %37, %41 : vector<2x32xf32>
      %43 = math.tanh %42 : vector<2x32xf32>
      %cst_24 = arith.constant 1.000000e+00 : f32
      %44 = vector.broadcast %cst_24 : f32 to vector<2x32xf32>
      %45 = arith.subf %44, %36 : vector<2x32xf32>
      %46 = arith.mulf %45, %43 : vector<2x32xf32>
      %47 = arith.mulf %36, %arg12 : vector<2x32xf32>
      %48 = arith.addf %46, %47 : vector<2x32xf32>
      %49 = arith.addf %48, %15 : vector<2x32xf32>
      %c0_25 = arith.constant 0 : index
      %c0_26 = arith.constant 0 : index
      %50 = vector.load %arg10[%c0_25, %c0_26] : memref<2x64xf32, #tpu.memory_space<vmem>>, vector<2x32xf32>
      tpu.vector_store %arg10[%c0_25, %c0_26], %49 {strides = array<i32>} : memref<2x64xf32, #tpu.memory_space<vmem>>, vector<2x32xf32>,
      %c0_27 = arith.constant 0 : index
      %c32 = arith.constant 32 : index
      %51 = vector.load %arg10[%c0_27, %c32] : memref<2x64xf32, #tpu.memory_space<vmem>>, vector<2x32xf32>
      tpu.vector_store %arg10[%c0_27, %c32], %arg13 {strides = array<i32>} : memref<2x64xf32, #tpu.memory_space<vmem>>, vector<2x32xf32>,
      %c0_28 = arith.constant 0 : index
      %c0_29 = arith.constant 0 : index
      %52 = vector.load %arg10[%c0_28, %c0_29] : memref<2x64xf32, #tpu.memory_space<vmem>>, vector<2x64xf32>
      %53 = arith.truncf %52 : vector<2x64xf32> to vector<2x64xbf16>
      %cst_30 = arith.constant dense<0.000000e+00> : vector<2x128xf32>
      %54 = tpu.matmul %53, %5, %cst_30 {dimension_numbers = #tpu.dot_dimension_numbers<[1], [0], [0], [1], [0, 0, 1, 1], [], []>} : vector<2x64xbf16>, vector<64x128xbf16>, vector<2x128xf32> -> vector<2x128xf32>
      %55 = vector.broadcast %6 : vector<1x128xf32> to vector<2x128xf32>
      %56 = arith.addf %54, %55 : vector<2x128xf32>
      %57 = vector.extract_strided_slice %56 {offsets = [0, 0], sizes = [2, 32], strides = [1, 1]} : vector<2x128xf32> to vector<2x32xf32>
      %58 = arith.negf %57 : vector<2x32xf32>
      %59 = math.exp %58 : vector<2x32xf32>
      %cst_31 = arith.constant 1.000000e+00 : f32
      %60 = vector.broadcast %cst_31 : f32 to vector<2x32xf32>
      %61 = arith.addf %60, %59 : vector<2x32xf32>
      %62 = arith.divf %60, %61 : vector<2x32xf32>
      %63 = vector.extract_strided_slice %56 {offsets = [0, 32], sizes = [2, 32], strides = [1, 1]} : vector<2x128xf32> to vector<2x32xf32>
      %64 = arith.negf %63 : vector<2x32xf32>
      %65 = math.exp %64 : vector<2x32xf32>
      %cst_32 = arith.constant 1.000000e+00 : f32
      %66 = vector.broadcast %cst_32 : f32 to vector<2x32xf32>
      %67 = arith.addf %66, %65 : vector<2x32xf32>
      %68 = arith.divf %66, %67 : vector<2x32xf32>
      %69 = vector.extract_strided_slice %56 {offsets = [0, 64], sizes = [2, 32], strides = [1, 1]} : vector<2x128xf32> to vector<2x32xf32>
      %70 = vector.extract_strided_slice %56 {offsets = [0, 96], sizes = [2, 32], strides = [1, 1]} : vector<2x128xf32> to vector<2x32xf32>
      %71 = arith.mulf %62, %70 : vector<2x32xf32>
      %72 = arith.addf %69, %71 : vector<2x32xf32>
      %73 = math.tanh %72 : vector<2x32xf32>
      %cst_33 = arith.constant 1.000000e+00 : f32
      %74 = vector.broadcast %cst_33 : f32 to vector<2x32xf32>
      %75 = arith.subf %74, %68 : vector<2x32xf32>
      %76 = arith.mulf %75, %73 : vector<2x32xf32>
      %77 = arith.mulf %68, %arg13 : vector<2x32xf32>
      %78 = arith.addf %76, %77 : vector<2x32xf32>
      %79 = arith.addf %78, %49 : vector<2x32xf32>
      %80 = arith.index_cast %arg11 : i32 to index
      %c0_34 = arith.constant 0 : index
      %c0_35 = arith.constant 0 : index
      %81 = vector.load %arg7[%80, %c0_34, %c0_35] : memref<16x2x32xf32, #tpu.memory_space<vmem>>, vector<1x2x32xf32>
      %82 = vector.shape_cast %81 : vector<1x2x32xf32> to vector<2x32xf32>
      %83 = vector.shape_cast %79 : vector<2x32xf32> to vector<1x2x32xf32>
      tpu.vector_store %arg7[%80, %c0_34, %c0_35], %83 {strides = array<i32>} : memref<16x2x32xf32, #tpu.memory_space<vmem>>, vector<1x2x32xf32>,
      scf.yield %48, %78 : vector<2x32xf32>, vector<2x32xf32>
    }
    %c16_i32_13 = arith.constant 16 : i32
    %c0_14 = arith.constant 0 : index
    %c0_15 = arith.constant 0 : index
    %11 = vector.load %arg8[%c0_14, %c0_15] : memref<2x32xf32, #tpu.memory_space<vmem>>, vector<2x32xf32>
    tpu.vector_store %arg8[%c0_14, %c0_15], %10#0 {strides = array<i32>} : memref<2x32xf32, #tpu.memory_space<vmem>>, vector<2x32xf32>,
    %c0_16 = arith.constant 0 : index
    %c0_17 = arith.constant 0 : index
    %12 = vector.load %arg9[%c0_16, %c0_17] : memref<2x32xf32, #tpu.memory_space<vmem>>, vector<2x32xf32>
    tpu.vector_store %arg9[%c0_16, %c0_17], %10#1 {strides = array<i32>} : memref<2x32xf32, #tpu.memory_space<vmem>>, vector<2x32xf32>,
    return
  }
  func.func @transform_0(%arg0: i32) -> (i32, i32, i32) {
    %c0_i32 = arith.constant 0 : i32
    %c0_i32_0 = arith.constant 0 : i32
    %c0_i32_1 = arith.constant 0 : i32
    return %arg0, %c0_i32, %c0_i32_0 : i32, i32, i32
  }
  func.func @transform_1(%arg0: i32) -> (i32, i32, i32) {
    %c0_i32 = arith.constant 0 : i32
    %c0_i32_0 = arith.constant 0 : i32
    %c0_i32_1 = arith.constant 0 : i32
    return %arg0, %c0_i32, %c0_i32_0 : i32, i32, i32
  }
  func.func @transform_2(%arg0: i32) -> (i32, i32) {
    %c0_i32 = arith.constant 0 : i32
    %c0_i32_0 = arith.constant 0 : i32
    %c0_i32_1 = arith.constant 0 : i32
    return %c0_i32, %c0_i32_0 : i32, i32
  }
  func.func @transform_3(%arg0: i32) -> (i32, i32) {
    %c0_i32 = arith.constant 0 : i32
    %c0_i32_0 = arith.constant 0 : i32
    %c0_i32_1 = arith.constant 0 : i32
    return %c0_i32, %c0_i32_0 : i32, i32
  }
  func.func @transform_4(%arg0: i32) -> (i32, i32) {
    %c0_i32 = arith.constant 0 : i32
    %c0_i32_0 = arith.constant 0 : i32
    %c0_i32_1 = arith.constant 0 : i32
    return %c0_i32, %c0_i32_0 : i32, i32
  }
  func.func @transform_5(%arg0: i32) -> (i32, i32) {
    %c0_i32 = arith.constant 0 : i32
    %c0_i32_0 = arith.constant 0 : i32
    %c0_i32_1 = arith.constant 0 : i32
    return %c0_i32, %c0_i32_0 : i32, i32
  }
  func.func @transform_6(%arg0: i32) -> (i32, i32, i32) {
    %c0_i32 = arith.constant 0 : i32
    %c0_i32_0 = arith.constant 0 : i32
    %c0_i32_1 = arith.constant 0 : i32
    return %arg0, %c0_i32, %c0_i32_0 : i32, i32, i32
  }
}

</mosaic_0001>

<bundles_post_ra>
// kernel: wavernn_forward.3
= control target key start
LH: loop header
LB: loop body
LE: loop exit
PB: predicated region body
PF: predicated region fallthrough
CT: control target
= control target key end

     0   :  { %vm50_vm0 = vcmask 261120   ;;  %s402_s1 = inlined_call_operand.vmem [shape: bf16[32,32], index: 1, kind: input, shape index: {}]   ;;  %s403_s0 = inlined_call_operand.vmem [shape: f32[32,32], index: 0, kind: input, shape index: {}]   ;;  %s404_s3 = inlined_call_operand.vmem [shape: bf16[32,32], index: 3, kind: input, shape index: {}]   ;;  %s405_s2 = inlined_call_operand.vmem [shape: f32[1,32], index: 2, kind: input, shape index: {}]   ;;  %s406_s4 = inlined_call_operand.vmem [shape: f32[1,32], index: 4, kind: input, shape index: {}]   ;;  %s407_s5 = inlined_call_operand.vmem [shape: f32[32,32], index: 5, kind: output, shape index: {}]  }
   0x1   :  { %v284_v0 = vld [vmem:[%s402_s1] sm:$0xff]   ;;  %v285_v1 = vld [vmem:[%s402_s1 + $0x8] sm:$0xff]   ;;  %v23_v5 = vld [vmem:[%s403_s0 + $0x10] sm:$0xff] }
   0x2   :  { %268 = vmatprep.subr.bf16.mxu0 %v284_v0  ;;  %v21_v2 = vld [vmem:[%s403_s0] sm:$0xff]  ;;  %v22_v3 = vld [vmem:[%s403_s0 + $0x8] sm:$0xff]  ;;  %v24_v6 = vld [vmem:[%s403_s0 + $0x18] sm:$0xff] }
   0x3   :  { %269 = vmatpush3.bf16.msra.mxu0 %v284_v0  ;;  %v25_v4 = vpack.c.bf16 %v22_v3, %v21_v2  ;;  %v26_v7 = vpack.c.bf16 %v24_v6, %v23_v5  ;;  %v286_v8 = vld [vmem:[%s404_s3] sm:$0xff]   ;;  %v287_v9 = vld [vmem:[%s404_s3 + $0x8] sm:$0xff]  }
   0x4   :  { %270 = vmatprep.subr.bf16.mxu0 %v285_v1  ;;  %276 = vmatprep.subr.bf16.mxu1 %v286_v8  ;;  %v250_v10 = vld [vmem:[%s405_s2] ss:$0 sm:$0xff] }
   0x5   :  { %272 = vmatprep.mubr.msk.bf16.mxu0 %vm50_vm0, %v25_v4  ;;  %277 = vmatpush3.bf16.msra.mxu1 %v286_v8  ;;  %v255_v25 = vld [vmem:[%s406_s4] ss:$0 sm:$0xff] }
   0x6   :  { %278 = vmatprep.subr.bf16.mxu1 %v287_v9 }
   0x7   :  { %271 = vmatpush3.bf16.msra.mxu0 %v285_v1 }
   0x9   :  { %279 = vmatpush3.bf16.msra.mxu1 %v287_v9 }
   0xa   :  { %273 = vmatmul.mubr.msk.bf16.vlgmr.msra.gmra.mrb[0].mxu0 %vm50_vm0, %v26_v7 }
  0xdd   :  { %v274_v11 = vpop.f32.mrb[0].mxu0 }
  0xde   :  { %v100_v12 = vadd.f32 %v274_v11, %v250_v10  ;;  %v91_v13 = vpop.f32.mrb[1].mxu0 }
  0xdf   :  { %v92_v14 = vadd.f32 %v250_v10, %v91_v13  ;;  %v275_v15 = vpop.f32.mrb[2].mxu0 }
  0xe0   :  { %v103_v16 = vadd.f32 %v275_v15, %v250_v10  ;;  %v94_v17 = vpop.f32.mrb[3].mxu0  ;;  %v108_v19 = vmax.f32 %v100_v12, 0.0 }
  0xe1   :  { %v95_v18 = vadd.f32 %v250_v10, %v94_v17  ;;  %v106_v21 = vmax.f32 %v92_v14, 0.0 }
  0xe2   :  { %v109_v20 = vmax.f32 %v103_v16, 0.0 }
  0xe3   :  { %v107_v22 = vmax.f32 %v95_v18, 0.0 }
  0xe4   :  { %v111_v23 = vpack.c.bf16 %v109_v20, %v108_v19 }
  0xe5   :  { %v110_v24 = vpack.c.bf16 %v107_v22, %v106_v21 }
  0xe7   :  { %280 = vmatprep.mubr.msk.bf16.mxu1 %vm50_vm0, %v110_v24 }
  0xe8   :  { %281 = vmatmul.mubr.msk.bf16.vlgmr.msra.gmra.mrb[0].mxu1 %vm50_vm0, %v111_v23 }
 0x1bb   :  { %v282_v26 = vpop.f32.mrb[0].mxu1 }
 0x1bc   :  { %v368_v27 = vadd.f32 %v282_v26, %v255_v25  ;;  %v175_v28 = vpop.f32.mrb[1].mxu1 }
 0x1bd   :  { %v176_v29 = vadd.f32 %v255_v25, %v175_v28  ;;  %v283_v30 = vpop.f32.mrb[2].mxu1 }
 0x1be   :  { %v370_v31 = vadd.f32 %v283_v30, %v255_v25  ;;  %v178_v32 = vpop.f32.mrb[3].mxu1  ;;  %v196_v33 = vsel %vm50_vm0, %v368_v27, -inf }
 0x1bf   :  { %v179_v34 = vadd.f32 %v255_v25, %v178_v32  ;;  %197 = vmax.xlane.f32.xlu1 %v196_v33  ;;  %v190_v35 = vsel %vm50_vm0, %v176_v29, -inf }
 0x1c0   :  { %191 = vmax.xlane.f32.xlu0 %v190_v35  ;;  %v199_v36 = vsel %vm50_vm0, %v370_v31, -inf }
 0x1c1   :  { %v193_v37 = vsel %vm50_vm0, %v179_v34, -inf }
 0x1c3   :  { %200 = vmax.xlane.f32.xlu1 %v199_v36 }
 0x1c4   :  { %194 = vmax.xlane.f32.xlu0 %v193_v37 }
 0x24c   :  { %v198_v38 = vpop.xlane.xlu1 %197 }
 0x24d   :  { %v204_v39 = vsub.f32 %v368_v27, %v198_v38  ;;  %v192_v40 = vpop.xlane.xlu0 %191 }
 0x24e   :  { %v202_v41 = vsub.f32 %v176_v29, %v192_v40 }
 0x24f   :  { %v210_v42 = vmul.f32 1.442695, %v204_v39 }
 0x250   :  { %v206_v43 = vmul.f32 1.442695, %v202_v41  ;;  %v201_v44 = vpop.xlane.xlu1 %200 }
 0x251   :  { %v205_v45 = vsub.f32 %v370_v31, %v201_v44  ;;  %v195_v46 = vpop.xlane.xlu0 %194 }
 0x252   :  { %288 = vpow2.f32 %v206_v43  ;;  %v203_v47 = vsub.f32 %v179_v34, %v195_v46 }
 0x253   :  { %290 = vpow2.f32 %v210_v42  ;;  %v212_v48 = vmul.f32 1.442695, %v205_v45 }
 0x254   :  { %v208_v49 = vmul.f32 1.442695, %v203_v47 }
 0x256   :  { %292 = vpow2.f32 %v208_v49 }
 0x257   :  { %294 = vpow2.f32 %v212_v48 }
 0x25c   :  { %v289_v50 = vpop.eup %288 }
 0x25d   :  { %v214_v51 = vsel %vm50_vm0, %v289_v50, 0.0  ;;  %v291_v52 = vpop.eup %290 }
 0x25e   :  { %215 = vadd.xlane.f32.xlu0 %v214_v51  ;;  %v220_v54 = vsel %vm50_vm0, %v291_v52, 0.0 }
 0x260   :  { %v293_v53 = vpop.eup %292 }
 0x261   :  { %v217_v55 = vsel %vm50_vm0, %v293_v53, 0.0  ;;  %v295_v56 = vpop.eup %294 }
 0x262   :  { %221 = vadd.xlane.f32.xlu0 %v220_v54  ;;  %218 = vadd.xlane.f32.xlu1 %v217_v55  ;;  %v223_v57 = vsel %vm50_vm0, %v295_v56, 0.0 }
 0x266   :  { %224 = vadd.xlane.f32.xlu1 %v223_v57 }
 0x2eb   :  { %v216_v58 = vpop.xlane.xlu0 %215 }
 0x2ec   :  { %296 = vlog2.f32 %v216_v58 }
 0x2ef   :  { %v219_v59 = vpop.xlane.xlu1 %218  ;;  %v222_v60 = vpop.xlane.xlu0 %221 }
 0x2f0   :  { %298 = vlog2.f32 %v219_v59 }
 0x2f1   :  { %300 = vlog2.f32 %v222_v60 }
 0x2f3   :  { %v225_v61 = vpop.xlane.xlu1 %224 }
 0x2f4   :  { %302 = vlog2.f32 %v225_v61 }
 0x2f6   :  { %v297_v62 = vpop.eup %296 }
 0x2f7   :  { %v227_v63 = vmul.f32 0.6931472, %v297_v62 }
 0x2f9   :  { %v234_v0 = vadd.f32 %v227_v63, %v192_v40 }
 0x2fa   :  { %v299_v1 = vpop.eup %298 }
 0x2fb   :  { %v301_v2 = vpop.eup %300  ;;  %v238_v3 = vsub.f32 %v176_v29, %v234_v0  ;;  %v229_v4 = vmul.f32 0.6931472, %v299_v1 }
 0x2fc   :  { %v231_v5 = vmul.f32 0.6931472, %v301_v2 }
 0x2fd   :  { %242 = vst.msk [vmem:[%s407_s5] sm:$0xff] %vm50_vm0, %v238_v3  ;;  %v235_v6 = vadd.f32 %v229_v4, %v195_v46 }
 0x2fe   :  { %v303_v7 = vpop.eup %302  ;;  %v236_v8 = vadd.f32 %v231_v5, %v198_v38 }
 0x2ff   :  { %v239_v9 = vsub.f32 %v179_v34, %v235_v6  ;;  %v233_v10 = vmul.f32 0.6931472, %v303_v7 }
 0x300   :  { %v240_v11 = vsub.f32 %v368_v27, %v236_v8 }
 0x301   :  { %243 = vst.msk [vmem:[%s407_s5 + $0x8] sm:$0xff] %vm50_vm0, %v239_v9  ;;  %v237_v12 = vadd.f32 %v233_v10, %v201_v44 }
 0x302   :  { %244 = vst.msk [vmem:[%s407_s5 + $0x10] sm:$0xff] %vm50_vm0, %v240_v11 }
 0x303   :  { %v241_v13 = vsub.f32 %v370_v31, %v237_v12 }
 0x305   :  { %245 = vst.msk [vmem:[%s407_s5 + $0x18] sm:$0xff] %vm50_vm0, %v241_v13 }

// kernel: wavernn_forward.2
= control target key start
LH: loop header
LB: loop body
LE: loop exit
PB: predicated region body
PF: predicated region fallthrough
CT: control target
= control target key end

     0   :  { %vm28_vm0 = vcmask 254976   ;;  %v420_v0 = vmov 0.0   ;;  %s537_s23 = smov 0   ;;  %s598_s0 = inlined_call_operand.vmem [shape: f32[16,2,32], index: 0, kind: input, shape index: {}]   ;;  %s599_s1 = inlined_call_operand.vmem [shape: f32[16,2,96], index: 1, kind: input, shape index: {}]   ;;  %s600_s2 = inlined_call_operand.vmem [shape: bf16[32,96], index: 2, kind: input, shape index: {}]   ;;  %s601_s3 = inlined_call_operand.vmem [shape: f32[1,32], index: 3, kind: input, shape index: {}]   ;;  %s602_s4 = inlined_call_operand.vmem [shape: bf16[64,128], index: 4, kind: input, shape index: {}]   ;;  %s603_s6 = inlined_call_operand.vmem [shape: f32[16,2,32], index: 6, kind: output, shape index: {}]   ;;  %s604_s5 = inlined_call_operand.vmem [shape: f32[1,128], index: 5, kind: input, shape index: {}]  }
   0x1   :  { %29 = vst.msk [vmem:[#allocation2] sm:$0x3] %vm28_vm0, %v420_v0  ;;  %30 = vst.msk [vmem:[#allocation3] sm:$0x3] %vm28_vm0, %v420_v0  ;;  %v466_v1 = vld [vmem:[%s600_s2] sm:$0xf] }
   0x2   :  { %v471_v2 = vld [vmem:[%s600_s2 + $0x4] sm:$0xf]  ;;  %v476_v3 = vld [vmem:[%s600_s2 + $0x8] sm:$0xf]  ;;  %v481_v4 = vld [vmem:[%s600_s2 + $0xc] sm:$0xf] }
   0x3   :  { %v486_v5 = vld [vmem:[%s601_s3] ss:$0 sm:$0xff]  ;;  %v496_v7 = vld [vmem:[%s602_s4 + $0x4] sm:$0xf]  ;;  %v501_v8 = vld [vmem:[%s602_s4 + $0x8] sm:$0xf] }
   0x4   :  { %v491_v6 = vld [vmem:[%s602_s4] sm:$0xf]  ;;  %v506_v9 = vld [vmem:[%s602_s4 + $0xc] sm:$0xf]  ;;  %v511_v10 = vld [vmem:[%s602_s4 + $0x10] sm:$0xf] }
   0x5   :  { %v516_v11 = vld [vmem:[%s602_s4 + $0x14] sm:$0xf]  ;;  %v521_v12 = vld [vmem:[%s602_s4 + $0x18] sm:$0xf]  ;;  %v526_v13 = vld [vmem:[%s602_s4 + $0x1c] sm:$0xf] }
   0x6   :  { %v531_v14 = vld [vmem:[%s604_s5] ss:$0 sm:$0xff] }
   0x8   :  { %v45_v15 = vld [vmem:[#allocation2] sm:$0x3]   ;;  %v46_v16 = vld [vmem:[#allocation3] sm:$0x3]  }
   0x9 LB: > { %v314_v17 = vcombine.low %v466_v1, %v471_v2  ;;  %v421_v18 = vmov 0.0   ;;  %vm422_vm1 = vmmov 0   ;;  %v315_v19 = vcombine.low %v476_v3, %v481_v4  ;;  %s423_s4 = smov 64   ;;  %s424_s5 = smov 32   ;;  %s418_s23 = sphi %s537_s23, %s52_s23   ;;  %v414_v15 = vphi %v45_v15, %v606_v15   ;;  %v410_v16 = vphi %v46_v16, %v605_v16  }
   0xa   : > { %334 = vmatprep.subr.bf16.mxu0 %v421_v18  ;;  %338 = vmatprep.mubr.msk.bf16.mxu0 %vm422_vm1, %v421_v18  ;;  %v60_v20 = vpack.c.bf16 %v414_v15, %v414_v15  ;;  %vm73_vm2 = vcmask 261120   ;;  %s553_s24 = sshll.u32 %s418_s23, 1  ;;  %v320_v37 = vcombine.low %v491_v6, %v496_v7  ;;  %s425_s7 = smov 96   ;;  %v321_v40 = vcombine.low %v501_v8, %v506_v9 }
   0xb   : > { %335 = vmatpush3.bf16.msra.mxu0 %v314_v17  ;;  %129 = vrot.lane.b32.xlu0 %v486_v5, %s423_s4  ;;  %s58_s27 = scalar_lea.vmem %s599_s1, %s553_s24  ;;  %s56_s30 = scalar_lea.vmem %s598_s0, %s553_s24  ;;  %v322_v41 = vcombine.low %v511_v10, %v516_v11  ;;  %v323_v43 = vcombine.low %v521_v12, %v526_v13  ;;  %vm171_vm3 = vcmask 517376   ;;  %vm205_vm4 = vcmask 523264  }
   0xc   : > { %336 = vmatprep.subr.bf16.mxu0 %v421_v18  ;;  %342 = vmatprep.subr.bf16.mxu1 %v421_v18  ;;  %v59_v27 = vld [vmem:[%s58_s27] sm:$0x3]  ;;  %s279_s10 = scalar_lea.vmem %s603_s6, %s553_s24  ;;  %s52_s23 = sadd.s32 1, %s418_s23  }
   0xd   : > { %350 = vmatprep.mubr.msk.bf16.mxu1 %vm422_vm1, %v421_v18  ;;  %343 = vmatpush3.bf16.msra.mxu1 %v320_v37  ;;  %v57_v39 = vld [vmem:[%s56_s30] sm:$0x3]  ;;  %p49_p0 = scmp.ge.s32.totalorder %s52_s23, 16  }
   0xe   : > { %344 = vmatprep.subr.bf16.mxu1 %v421_v18 }
   0xf   : > { %337 = vmatpush3.bf16.msra.mxu0 %v315_v19 }
  0x11   : > { %345 = vmatpush3.bf16.msra.mxu1 %v321_v40 }
  0x12   : > { %339 = vmatmul.mubr.msk.bf16.vlgmr.msra.gmra.mrb[0].mxu0 %vm73_vm2, %v60_v20  ;;  %346 = vmatprep.subr.bf16.mxu1 %v421_v18 }
  0x15   : > { %347 = vmatpush3.bf16.msra.mxu1 %v322_v41 }
  0x16   : > { %348 = vmatprep.subr.bf16.mxu1 %v421_v18 }
  0x19   : > { %349 = vmatpush3.bf16.msra.mxu1 %v323_v43 }
  0x7d   : > { %v130_v21 = vpop.permute.xlu0 %129 }
  0xe5   : > { %v111_v22 = vpop.f32.mrb[0].mxu0 }
  0xe6   : > { %v132_v23 = vadd.f32 %v130_v21, %v111_v22  ;;  %v340_v24 = vpop.f32.mrb[1].mxu0  ;;  %v117_v28 = vadd.f32 %v111_v22, %v59_v27 }
  0xe7   : > { %v114_v25 = vpop.f32.mrb[2].mxu0 }
  0xe8   : > { %134 = vrot.lane.b32.xlu0 %v132_v23, %s423_s4  ;;  %v341_v26 = vpop.f32.mrb[3].mxu0  ;;  %v317_v29 = vmul.f32 -1.442695, %v117_v28 }
  0xea   : > { %384 = vpow2.f32 %v317_v29 }
  0xec   : > { %151 = vrot.lane.b32.xlu0 %v414_v15, %s424_s5 }
  0xf4   : > { %v385_v30 = vpop.eup %384 }
  0xf5   : > { %v121_v31 = vadd.f32 1.0, %v385_v30 }
  0xf7   : > { %386 = vrcp.f32 %v121_v31 }
 0x101   : > { %v387_v32 = vpop.eup %386 }
 0x102   : > { %v144_v44 = vsub.f32 1.0, %v387_v32 }
 0x15a   : > { %v135_v33 = vpop.permute.xlu0 %134 }
 0x15b   : > { %v137_v34 = vmul.f32 %v387_v32, %v135_v33 }
 0x15d   : > { %139 = vrot.lane.b32.xlu1 %v137_v34, %s423_s4 }
 0x15e   : > { %v152_v42 = vpop.permute.xlu0 %151 }
 0x15f   : > { %v154_v46 = vmul.f32 %v387_v32, %v152_v42 }
 0x1cf   : > { %v140_v35 = vpop.permute.xlu1 %139 }
 0x1d0   : > { %v142_v36 = vadd.f32 %v140_v35, %v59_v27 }
 0x1d2   : > { %388 = vtanh.f32 %v142_v36 }
 0x1dc   : > { %v389_v38 = vpop.eup %388 }
 0x1dd   : > { %146 = vrot.lane.b32.xlu1 %v389_v38, %s425_s7 }
 0x1e1   : > { %157 = vrot.lane.b32.xlu1 %v57_v39, %s424_s5 }
 0x1e5   : > { %168 = vrot.lane.b32.xlu1 %v410_v16, %s424_s5 }
 0x24f   : > { %v147_v45 = vpop.permute.xlu1 %146 }
 0x250   : > { %v149_v47 = vmul.f32 %v147_v45, %v144_v44 }
 0x252   : > { %v155_v48 = vadd.f32 %v154_v46, %v149_v47 }
 0x253   : > { %v158_v49 = vpop.permute.xlu1 %157 }
 0x254   : > { %v160_v50 = vadd.f32 %v158_v49, %v155_v48 }
 0x256   : > { %162 = vrot.lane.b32.xlu0 %v160_v50, %s425_s7 }
 0x257   : > { %v169_v51 = vpop.permute.xlu1 %168 }
 0x2c8   : > { %v163_v52 = vpop.permute.xlu0 %162 }
 0x2c9   : > { %166 = vst.msk [vmem:[#allocation4] sm:$0x3] %vm28_vm0, %v163_v52 }
 0x2ca   : > { %172 = vst.msk [vmem:[#allocation4] sm:$0x3] %vm171_vm3, %v169_v51 }
 0x2d1   : > { %v173_v53 = vld [vmem:[#allocation4] sm:$0x3] }
 0x2d2   : > { %v174_v54 = vpack.c.bf16 %v173_v53, %v173_v53 }
 0x2d4   : > { %351 = vmatmul.mubr.msk.bf16.vlgmr.msra.gmra.mrb[0].mxu1 %vm205_vm4, %v174_v54 }
 0x3a7   : > { %v243_v55 = vpop.f32.mrb[0].mxu1 }
 0x3a8   : > { %v244_v56 = vadd.f32 %v531_v14, %v243_v55  ;;  %v352_v57 = vpop.f32.mrb[1].mxu1 }
 0x3a9   : > { %v246_v58 = vpop.f32.mrb[2].mxu1 }
 0x3aa   : > { %256 = vrot.lane.b32.xlu0 %v244_v56, %s424_s5  ;;  %v353_v59 = vpop.f32.mrb[3].mxu1  ;;  %v325_v60 = vmul.f32 -1.442695, %v244_v56 }
 0x3ac   : > { %390 = vpow2.f32 %v325_v60 }
 0x3b6   : > { %v391_v61 = vpop.eup %390 }
 0x3b7   : > { %v252_v62 = vadd.f32 1.0, %v391_v61 }
 0x3b9   : > { %392 = vrcp.f32 %v252_v62 }
 0x3c3   : > { %v393_v63 = vpop.eup %392 }
 0x3c4   : > { %v266_v19 = vsub.f32 1.0, %v393_v63  ;;  %v272_v21 = vmul.f32 %v393_v63, %v169_v51 }
 0x41c   : > { %v257_v0 = vpop.permute.xlu0 %256 }
 0x41d   : > { %v259_v15 = vmul.f32 %v393_v63, %v257_v0 }
 0x41f   : > { %261 = vrot.lane.b32.xlu1 %v259_v15, %s423_s4 }
 0x491   : > { %v262_v16 = vpop.permute.xlu1 %261 }
 0x492   : > { %v264_v17 = vadd.f32 %v262_v16, %v244_v56 }
 0x494   : > { %394 = vtanh.f32 %v264_v17 }
 0x49e   : > { %v395_v18 = vpop.eup %394 }
 0x49f   : > { %268 = vrot.lane.b32.xlu0 %v395_v18, %s425_s7 }
 0x4a3   : > { %282 = vrot.lane.b32.xlu0 %v155_v48, %s425_s7 }
 0x511   : > { %v269_v20 = vpop.permute.xlu0 %268 }
 0x512   : > { %v271_v22 = vmul.f32 %v269_v20, %v266_v19 }
 0x514   : > { %v273_v23 = vadd.f32 %v272_v21, %v271_v22 }
 0x515   : > { %v283_v24 = vpop.permute.xlu0 %282  }
 0x516   : > { %v274_v25 = vadd.f32 %v273_v23, %v160_v50  ;;  %v606_v15 = vmov %v283_v24  ;;  %290 = vst.msk [vmem:[#allocation2] sm:$0x3] (%p49_p0), %vm28_vm0, %v283_v24 }
 0x518   : > { %276 = vrot.lane.b32.xlu1 %v274_v25, %s425_s7 }
 0x51c   : > { %286 = vrot.lane.b32.xlu1 %v273_v23, %s425_s7 }
 0x589   :  { %51 = sbr.rel (!%p49_p0) target bundleno = 9 (0x9), region = 58 }
 0x58a   : > { %v277_v26 = vpop.permute.xlu1 %276 }
 0x58b   : > { %280 = vst.msk [vmem:[%s279_s10] sm:$0x3] %vm28_vm0, %v277_v26 }
 0x58e   : > { %v287_v27 = vpop.permute.xlu1 %286  }
 0x58f   : > { %v605_v16 = vmov %v287_v27  ;;  %291 = vst.msk [vmem:[#allocation3] sm:$0x3] (%p49_p0), %vm28_vm0, %v287_v27 }

</bundles_post_ra>
